<compile_context>
chip_gen: v5e
topology: v5e:2x2
jax: 0.10.0
libtpu: 0.0.40
codegen_flags: <defaults>
</compile_context>

<pallas_src>
import jax
import jax.numpy as jnp
from jax.experimental import pallas as pl
from jax.experimental.pallas import tpu as pltpu


def _attn_topic_kernel(idx_ref, tab_ref, w_ref, b_ref, out_ref):
    # idx_ref : (tb, S)      int32 word indices (this batch tile)
    # tab_ref : (V, 1+E)     fused table: col 0 = exp(key@q - max), cols 1: = emb
    # w_ref   : (1+E, Tp)    FC weight, zero row 0 (kills the score column), lane-padded
    # b_ref   : (1, Tp)      FC bias, lane-padded
    # out_ref : (tb, Tp)     topic logits (lane-padded)
    tb, S = idx_ref.shape
    V, Ep1 = tab_ref.shape

    idx = idx_ref[...]                                               # (tb, S) int32

    # ---- one-hot selector in bf16 (0/1 exact; half the vreg/VMEM footprint) --
    vocab = jax.lax.broadcasted_iota(jnp.int32, (tb, S, V), 2)
    onehot = (idx[:, :, None] == vocab).astype(jnp.bfloat16)         # (tb, S, V)
    onehot2 = onehot.reshape(tb * S, V)

    # ---- ONE fused gather matmul (MXU): exp-scores + embeddings together -----
    g = jnp.dot(onehot2, tab_ref[...],
                preferred_element_type=jnp.float32)                  # (tb*S, 1+E)
    g3 = g.reshape(tb, S, Ep1)

    # ---- softmax weights: no per-token exp needed (done once on parameters) --
    es = g3[:, :, 0:1]                                               # (tb, S, 1)
    denom = jnp.sum(es, axis=1, keepdims=True)                       # (tb, 1, 1)
    inv = pl.reciprocal(denom, approx=True)                          # EUP slot
    inv = inv * (2.0 - denom * inv)                                  # Newton -> ~exact
    p = es * inv                                                     # (tb, S, 1)

    # ---- context = sum_s p[b,s] * emb[idx[b,s]] ------------------------------
    # VPU lane-broadcast multiply + XLU sublane reduce (no block-diag selector).
    # Column 0 of ctx is a dead value (sum p*es); the zero row in w_ref kills it.
    ctx = jnp.sum(p * g3, axis=1)                                    # (tb, 1+E)

    # ---- FC topic head (lane-padded output -> unmasked stores) ---------------
    logits = jnp.dot(ctx, w_ref[...],
                     preferred_element_type=jnp.float32) + b_ref[...]
    out_ref[...] = logits.astype(out_ref.dtype)


def _default_batch_tile(B):
    # Aim for >= 2 grid steps (v7x has 2 TensorCores) while keeping tiles
    # sublane-aligned (tb % 8 == 0) whenever we actually tile the batch.
    half = B // 2
    if half >= 8 and half % 8 == 0 and B % half == 0:
        return half
    return B


def model_forward(context_idxs, params, *, batch_tile=None):
    """context_idxs: (B, S) int32 word indices -> (B, num_topic) logits."""
    key_table = params["key_table"]          # (V, K)
    emb_table = params["emb_table"]          # (V, E)
    V, _ = key_table.shape
    E = emb_table.shape[1]
    T = params["fc_w"].shape[1]
    B, S = context_idxs.shape

    # Parameter-only precompute (tiny, once per call): per-vocab attention score,
    # globally-shifted exponent, fused with the embedding table.
    score_vec = key_table @ params["query"]                          # (V,)
    es_vec = jnp.exp(score_vec - jnp.max(score_vec))                 # (V,) in (0,1]
    fused_tab = jnp.concatenate(
        [es_vec[:, None].astype(jnp.float32), emb_table.astype(jnp.float32)],
        axis=1)                                                      # (V, 1+E)

    # Lane-dense classifier head: pad T up to a multiple of 128 so the output
    # store is a full-lane vst; prepend a zero row to absorb the score column.
    T_pad = ((T + 127) // 128) * 128
    w_p = jnp.zeros((1 + E, T_pad), jnp.float32).at[1:, :T].set(params["fc_w"])
    b_p = jnp.zeros((1, T_pad), jnp.float32).at[0, :T].set(params["fc_b"])

    tb = _default_batch_tile(B) if batch_tile is None else batch_tile
    assert B % tb == 0, "batch_tile must divide batch"
    # (8,128) layout rule: block last dim equals the full S, so only the
    # second-minor (batch) dim needs sublane alignment when actually tiled.
    assert tb == B or tb % 8 == 0, "batch tiling requires tb % 8 == 0"
    grid = (B // tb,)

    logits = pl.pallas_call(
        _attn_topic_kernel,
        out_shape=jax.ShapeDtypeStruct((B, T_pad), jnp.float32),
        grid=grid,
        in_specs=[
            pl.BlockSpec((tb, S), lambda i: (i, 0)),          # context indices
            pl.BlockSpec((V, 1 + E), lambda i: (0, 0)),       # fused table (resident)
            pl.BlockSpec((1 + E, T_pad), lambda i: (0, 0)),   # fc weight (padded)
            pl.BlockSpec((1, T_pad), lambda i: (0, 0)),       # fc bias (padded)
        ],
        out_specs=pl.BlockSpec((tb, T_pad), lambda i: (i, 0)),
        compiler_params=pltpu.CompilerParams(
            dimension_semantics=("parallel",)),
    )(context_idxs, fused_tab, w_p, b_p)
    return logits[:, :T]


def init_params(key, word_voc_dict_size, dim_key, dim_emb, dim_query,
                num_topic, query_var, emb_var):
    assert dim_key == dim_query, "keys and query must share the same dim"
    k1, k2, k3, k4 = jax.random.split(key, 4)
    return {
        "key_table": jax.random.normal(k1, (word_voc_dict_size, dim_key),
                                       jnp.float32),
        "emb_table": jax.random.normal(k2, (word_voc_dict_size, dim_emb),
                                       jnp.float32) * jnp.sqrt(emb_var),
        "query": jax.random.normal(k3, (dim_query,), jnp.float32)
                 * jnp.sqrt(query_var),
        "fc_w": jax.random.normal(k4, (dim_emb, num_topic), jnp.float32)
                * (1.0 / jnp.sqrt(dim_emb)),
        "fc_b": jnp.zeros((num_topic,), jnp.float32),
    }


def _reference(context_idxs, params):
    emb = params["emb_table"][context_idxs]
    keys = params["key_table"][context_idxs]
    scores = jnp.einsum("bsk,k->bs", keys, params["query"])
    p = jax.nn.softmax(scores, axis=-1)
    ctx = jnp.einsum("bs,bse->be", p, emb)
    return ctx @ params["fc_w"] + params["fc_b"]


if __name__ == "__main__":
    # small, TPU-friendly shapes implied by the forward pass
    word_voc_dict_size = 50
    dim_key = dim_query = 16
    dim_emb = 32
    num_topic = 4
    batch, seq = 2, 8

    key = jax.random.PRNGKey(0)
    kp, ki = jax.random.split(key)
    params = init_params(kp, word_voc_dict_size, dim_key, dim_emb, dim_query,
                         num_topic, query_var=1.0, emb_var=1.0)
    context_idxs = jax.random.randint(ki, (batch, seq), 0, word_voc_dict_size,
                                      dtype=jnp.int32)

    out = model_forward(context_idxs, params)
    out = jax.block_until_ready(out)

    ref = _reference(context_idxs, params)
    assert out.shape == (batch, num_topic)
    # Newton-refined reciprocal makes the normalization ~exact; remaining error
    # is f32 rounding / reassociation only.
    assert jnp.allclose(out, ref, atol=1e-3, rtol=1e-3)
    print("KERNEL_OK")
</pallas_src>

<mosaic_0001>
module attributes {stable_mosaic.version = 11 : i64} {
  func.func @_attn_topic_kernel(%arg0: i32, %arg1: memref<2x8xi32, #tpu.memory_space<vmem>>, %arg2: memref<50x33xf32, #tpu.memory_space<vmem>>, %arg3: memref<33x128xf32, #tpu.memory_space<vmem>>, %arg4: memref<1x128xf32, #tpu.memory_space<vmem>>, %arg5: memref<2x128xf32, #tpu.memory_space<vmem>>) attributes {dimension_semantics = [#tpu.dimension_semantics<parallel>], iteration_bounds = array<i64: 1>, scalar_prefetch = 0 : i64, scratch_operands = 0 : i64, tpu.core_type = #tpu.core_type<tc>, window_params = [{transform_indices = @transform_0, window_bounds = array<i64: 2, 8>}, {pipeline_mode = #tpu.pipeline_mode<synchronous>, transform_indices = @transform_1, window_bounds = array<i64: 50, 33>}, {pipeline_mode = #tpu.pipeline_mode<synchronous>, transform_indices = @transform_2, window_bounds = array<i64: 33, 128>}, {pipeline_mode = #tpu.pipeline_mode<synchronous>, transform_indices = @transform_3, window_bounds = array<i64: 1, 128>}, {transform_indices = @transform_4, window_bounds = array<i64: 2, 128>}]} {
    %c0 = arith.constant 0 : index
    %c0_0 = arith.constant 0 : index
    %0 = vector.load %arg1[%c0, %c0_0] : memref<2x8xi32, #tpu.memory_space<vmem>>, vector<2x8xi32>
    %1 = tpu.iota {dimensions = array<i32: 2>} : vector<2x8x50xi32>
    %2 = vector.shape_cast %0 : vector<2x8xi32> to vector<2x8x1xi32>
    %3 = vector.broadcast %2 : vector<2x8x1xi32> to vector<2x8x50xi32>
    %4 = arith.cmpi eq, %3, %1 : vector<2x8x50xi32>
    %5 = arith.extui %4 : vector<2x8x50xi1> to vector<2x8x50xi32>
    %6 = arith.sitofp %5 : vector<2x8x50xi32> to vector<2x8x50xf32>
    %7 = arith.truncf %6 : vector<2x8x50xf32> to vector<2x8x50xbf16>
    %8 = vector.shape_cast %7 : vector<2x8x50xbf16> to vector<16x50xbf16>
    %c0_1 = arith.constant 0 : index
    %c0_2 = arith.constant 0 : index
    %9 = vector.load %arg2[%c0_1, %c0_2] : memref<50x33xf32, #tpu.memory_space<vmem>>, vector<50x33xf32>
    %cst = arith.constant dense<0.000000e+00> : vector<16x33xf32>
    %10 = tpu.matmul %8, %9, %cst {dimension_numbers = #tpu.dot_dimension_numbers<[1], [0], [0], [1], [0, 0, 1, 1], [], []>} : vector<16x50xbf16>, vector<50x33xf32>, vector<16x33xf32> -> vector<16x33xf32>
    %11 = vector.shape_cast %10 : vector<16x33xf32> to vector<2x8x33xf32>
    %12 = vector.extract_strided_slice %11 {offsets = [0, 0, 0], sizes = [2, 8, 1], strides = [1, 1, 1]} : vector<2x8x33xf32> to vector<2x8x1xf32>
    %cst_3 = arith.constant dense<0.000000e+00> : vector<2x1xf32>
    %13 = vector.multi_reduction <add>, %12, %cst_3 [1] : vector<2x8x1xf32> to vector<2x1xf32>
    %14 = vector.shape_cast %13 : vector<2x1xf32> to vector<2x1x1xf32>
    %15 = tpu.reciprocal %14 {approx = true} : vector<2x1x1xf32> -> vector<2x1x1xf32>
    %16 = arith.mulf %14, %15 : vector<2x1x1xf32>
    %cst_4 = arith.constant 2.000000e+00 : f32
    %17 = vector.broadcast %cst_4 : f32 to vector<2x1x1xf32>
    %18 = arith.subf %17, %16 : vector<2x1x1xf32>
    %19 = arith.mulf %15, %18 : vector<2x1x1xf32>
    %20 = vector.broadcast %19 : vector<2x1x1xf32> to vector<2x8x1xf32>
    %21 = arith.mulf %12, %20 : vector<2x8x1xf32>
    %22 = vector.broadcast %21 : vector<2x8x1xf32> to vector<2x8x33xf32>
    %23 = arith.mulf %22, %11 : vector<2x8x33xf32>
    %cst_5 = arith.constant dense<0.000000e+00> : vector<2x33xf32>
    %24 = vector.multi_reduction <add>, %23, %cst_5 [1] : vector<2x8x33xf32> to vector<2x33xf32>
    %c0_6 = arith.constant 0 : index
    %c0_7 = arith.constant 0 : index
    %25 = vector.load %arg3[%c0_6, %c0_7] : memref<33x128xf32, #tpu.memory_space<vmem>>, vector<33x128xf32>
    %cst_8 = arith.constant dense<0.000000e+00> : vector<2x128xf32>
    %26 = tpu.matmul %24, %25, %cst_8 {dimension_numbers = #tpu.dot_dimension_numbers<[1], [0], [0], [1], [0, 0, 1, 1], [], []>} : vector<2x33xf32>, vector<33x128xf32>, vector<2x128xf32> -> vector<2x128xf32>
    %c0_9 = arith.constant 0 : index
    %c0_10 = arith.constant 0 : index
    %27 = vector.load %arg4[%c0_9, %c0_10] : memref<1x128xf32, #tpu.memory_space<vmem>>, vector<1x128xf32>
    %28 = vector.broadcast %27 : vector<1x128xf32> to vector<2x128xf32>
    %29 = arith.addf %26, %28 : vector<2x128xf32>
    %c0_11 = arith.constant 0 : index
    %c0_12 = arith.constant 0 : index
    %30 = vector.load %arg5[%c0_11, %c0_12] : memref<2x128xf32, #tpu.memory_space<vmem>>, vector<2x128xf32>
    tpu.vector_store %arg5[%c0_11, %c0_12], %29 {strides = array<i32>} : memref<2x128xf32, #tpu.memory_space<vmem>>, vector<2x128xf32>,
    return
  }
  func.func @transform_0(%arg0: i32) -> (i32, i32) {
    %c0_i32 = arith.constant 0 : i32
    %c0_i32_0 = arith.constant 0 : i32
    return %arg0, %c0_i32 : i32, i32
  }
  func.func @transform_1(%arg0: i32) -> (i32, i32) {
    %c0_i32 = arith.constant 0 : i32
    %c0_i32_0 = arith.constant 0 : i32
    %c0_i32_1 = arith.constant 0 : i32
    return %c0_i32, %c0_i32_0 : i32, i32
  }
  func.func @transform_2(%arg0: i32) -> (i32, i32) {
    %c0_i32 = arith.constant 0 : i32
    %c0_i32_0 = arith.constant 0 : i32
    %c0_i32_1 = arith.constant 0 : i32
    return %c0_i32, %c0_i32_0 : i32, i32
  }
  func.func @transform_3(%arg0: i32) -> (i32, i32) {
    %c0_i32 = arith.constant 0 : i32
    %c0_i32_0 = arith.constant 0 : i32
    %c0_i32_1 = arith.constant 0 : i32
    return %c0_i32, %c0_i32_0 : i32, i32
  }
  func.func @transform_4(%arg0: i32) -> (i32, i32) {
    %c0_i32 = arith.constant 0 : i32
    %c0_i32_0 = arith.constant 0 : i32
    return %arg0, %c0_i32 : i32, i32
  }
}

</mosaic_0001>

<bundles_post_ra>
// kernel: tpu_custom_call.1
= control target key start
LH: loop header
LB: loop body
LE: loop exit
PB: predicated region body
PF: predicated region fallthrough
CT: control target
= control target key end

     0   :  { %v19_v0 = vlaneseq  ;;  %s312_s0 = inlined_call_operand.vmem [shape: s32[2,8], index: 0, kind: input, shape index: {}]   ;;  %s313_s1 = inlined_call_operand.vmem [shape: f32[50,33], index: 1, kind: input, shape index: {}]   ;;  %s314_s2 = inlined_call_operand.vmem [shape: f32[33,128], index: 2, kind: input, shape index: {}]   ;;  %s315_s3 = inlined_call_operand.vmem [shape: f32[1,128], index: 3, kind: input, shape index: {}]   ;;  %s316_s4 = inlined_call_operand.hbm [shape: f32[2,128], index: 4, kind: output, shape index: {}]  }
   0x1   :  { %9 = vsyncpa [#allocation3], 0  ;;  %v18_v2 = vld [vmem:[%s312_s0] sm:$0x3]  ;;  %v49_v5 = vld [vmem:[%s313_s1 + $0x30] sm:$0x3] }
   0x2   :  { %v23_v1 = vshrl.u32 %v19_v0, 7  ;;  %v21_v3 = vperm.slane %v18_v2, 0  ;;  %v28_v4 = vperm.slane %v18_v2, 1  ;;  %vm59_vm0 = vcmask 1041408   ;;  %v48_v6 = vld [vmem:[%s313_s1 + $0x28] sm:$0xff]  ;;  %v47_v7 = vld [vmem:[%s313_s1 + $0x20] sm:$0xff] }
   0x3   :  { %195 = vmatpush.msk.msra.mxu0 %vm59_vm0, %v49_v5  ;;  %v46_v8 = vld [vmem:[%s313_s1 + $0x18] sm:$0xff]  ;;  %v45_v9 = vld [vmem:[%s313_s1 + $0x10] sm:$0xff]  ;;  %v44_v10 = vld [vmem:[%s313_s1 + $0x8] sm:$0xff]  ;;  %v20_v12 = vand.u32 127, %v19_v0  ;;  %v236_v14 = vmov 0.0   ;;  %vm55_vm3 = vcmask 408576  }
   0x4   :  { %202 = vset.pattern.permute.xlu0 %v23_v1  ;;  %v43_v11 = vld [vmem:[%s313_s1] sm:$0xff]  ;;  %v237_v23 = vmov 0   ;;  %vm85_vm4 = vcmask 7168   ;;  %vm152_vm5 = vcmask 1040384   ;;  %v140_v51 = vld [vmem:[%s314_s2 + $0x18] sm:$0xff]  ;;  %v139_v52 = vld [vmem:[%s314_s2 + $0x10] sm:$0xff] }
   0x5   :  { %73 = vmatpush.msra.mxu0 %v48_v6  ;;  %203 = vset.pattern.permute.xlu1 %v237_v23  ;;  %v141_v50 = vld [vmem:[%s314_s2 + $0x20] sm:$0x1]  ;;  %v138_v53 = vld [vmem:[%s314_s2 + $0x8] sm:$0xff]  ;;  %vm122_vm6 = vcmask 269312   ;;  %vm148_vm7 = vcmask 1041409   ;;  %s238_s14 = smov [#allocation2]  }
   0x6   :  { %197 = vmatpush.msk.msra.mxu1 %vm152_vm5, %v141_v50  ;;  %v137_v54 = vld [vmem:[%s314_s2] sm:$0xff]  ;;  %s182_s15 = sshll.u32 %s238_s14, 4  ;;  %s184_s18 = sshll.u32 %s316_s4, 4  ;;  %s183_s15 = int_to_ptr.vmem [resolvable:$true] %s182_s15  ;;  %s185_s18 = int_to_ptr.hbm [resolvable:$true] %s184_s18 }
   0x7   :  { %74 = vmatpush.msra.mxu0 %v47_v7 }
   0x8   :  { %168 = vmatpush.msra.mxu1 %v140_v51 }
   0x9   :  { %75 = vmatpush.msra.mxu0 %v46_v8 }
   0xa   :  { %169 = vmatpush.msra.mxu1 %v139_v52 }
   0xb   :  { %76 = vmatpush.msra.mxu0 %v45_v9 }
   0xc   :  { %26 = vperm.xlu0 %202, %v21_v3   ;;  %170 = vmatpush.msra.mxu1 %v138_v53 }
   0xd   :  { %77 = vmatpush.msra.mxu0 %v44_v10  ;;  %v205_v10 = vld [vmem:[%s315_s3] ss:$0 sm:$0xff] }
   0xe   :  { %171 = vmatpush.msra.mxu1 %v137_v54 }
   0xf   :  { %78 = vmatpush.msra.mxu0 %v43_v11 }
  0x14   :  { %33 = vperm.xlu0 %202, %v28_v4  }
  0x1c   :  { %204 = vset.pattern.permute.xlu0 %v237_v23 }
  0x7e   :  { %v27_v13 = vpop.permute.xlu0 %26 }
  0x7f   :  { %vm35_vm1 = vcmp.eq.s32.totalorder %v27_v13, %v20_v12 }
  0x80   :  { %v193_v15 = vsel %vm35_vm1, 1.0, %v236_v14 }
  0x81   :  { %v41_v17 = vpack.c.bf16 %v193_v15, %v193_v15 }
  0x83   :  { %v52_v20 = vunpack.c.l.b16 %v41_v17 }
  0x86   :  { %v34_v16 = vpop.permute.xlu0 %33 }
  0x87   :  { %vm36_vm2 = vcmp.eq.s32.totalorder %v34_v16, %v20_v12 }
  0x88   :  { %v194_v18 = vsel %vm36_vm2, 1.0, %v236_v14 }
  0x89   :  { %v42_v19 = vpack.c.bf16 %v194_v18, %v194_v18 }
  0x8b   :  { %v53_v21 = vunpack.c.l.b16 %v42_v19 }
  0x8d   :  { %v54_v22 = vpack.c.b16 %v53_v21, %v52_v20 }
  0x8f   :  { %196 = vmatmul.msk.bf16.vlgmr.msra.gmra.mxu0 %vm55_vm3, %v54_v22 }
 0x10c   :  { %v80_v24 = vpop.f32.mrf.mxu0 }
 0x10d   :  { %v86_v25 = vsel %vm85_vm4, %v80_v24, 0.0 }
 0x10e   :  { %v87_v26 = vrot.slane %v86_v25, 4 }
 0x110   :  { %v88_v27 = vadd.f32 %v87_v26, %v86_v25 }
 0x112   :  { %v89_v28 = vrot.slane %v88_v27, 2 }
 0x114   :  { %v82_v29 = vpop.f32.mrf.mxu0  ;;  %v90_v30 = vadd.f32 %v89_v28, %v88_v27 }
 0x115   :  { %v93_v31 = vsel %vm85_vm4, %v82_v29, 0.0 }
 0x116   :  { %v91_v32 = vrot.slane %v90_v30, 1  ;;  %v94_v33 = vrot.slane %v93_v31, 4 }
 0x118   :  { %v95_v34 = vadd.f32 %v94_v33, %v93_v31  ;;  %v92_v35 = vadd.f32 %v91_v32, %v90_v30 }
 0x11a   :  { %v96_v36 = vrot.slane %v95_v34, 2  ;;  %206 = vrcp.f32 %v92_v35 }
 0x11c   :  { %v97_v37 = vadd.f32 %v96_v36, %v95_v34 }
 0x11e   :  { %v98_v38 = vrot.slane %v97_v37, 1 }
 0x120   :  { %v207_v39 = vpop.eup %206  ;;  %v99_v40 = vadd.f32 %v98_v38, %v97_v37 }
 0x121   :  { %v102_v41 = vmul.f32 %v207_v39, %v92_v35 }
 0x122   :  { %208 = vrcp.f32 %v99_v40 }
 0x123   :  { %v104_v42 = vsub.f32 2.0, %v102_v41 }
 0x125   :  { %v106_v43 = vmul.f32 %v207_v39, %v104_v42 }
 0x127   :  { %v108_v44 = vmul.f32 %v106_v43, %v80_v24 }
 0x128   :  { %v209_v45 = vpop.eup %208 }
 0x129   :  { %v103_v46 = vmul.f32 %v209_v45, %v99_v40  ;;  %112 = vperm.xlu1 %203, %v108_v44  }
 0x12b   :  { %v105_v47 = vsub.f32 2.0, %v103_v46 }
 0x12d   :  { %v107_v48 = vmul.f32 %v209_v45, %v105_v47 }
 0x12f   :  { %v109_v49 = vmul.f32 %v107_v48, %v82_v29 }
 0x131   :  { %117 = vperm.xlu1 %203, %v109_v49  }
 0x19b   :  { %v113_v55 = vpop.permute.xlu1 %112 }
 0x19c   :  { %v120_v56 = vmul.f32 %v113_v55, %v80_v24 }
 0x19e   :  { %v123_v57 = vsel %vm122_vm6, %v120_v56, 0.0 }
 0x19f   :  { %v124_v58 = vrot.slane %v123_v57, 4 }
 0x1a1   :  { %v125_v59 = vadd.f32 %v124_v58, %v123_v57 }
 0x1a3   :  { %v118_v60 = vpop.permute.xlu1 %117  ;;  %v126_v62 = vrot.slane %v125_v59, 2 }
 0x1a4   :  { %v121_v61 = vmul.f32 %v118_v60, %v82_v29 }
 0x1a5   :  { %v127_v1 = vadd.f32 %v126_v62, %v125_v59 }
 0x1a6   :  { %v130_v63 = vsel %vm122_vm6, %v121_v61, 0.0 }
 0x1a7   :  { %v131_v0 = vrot.slane %v130_v63, 4  ;;  %v128_v4 = vrot.slane %v127_v1, 1 }
 0x1a9   :  { %v132_v2 = vadd.f32 %v131_v0, %v130_v63  ;;  %v129_v7 = vadd.f32 %v128_v4, %v127_v1 }
 0x1ab   :  { %v133_v3 = vrot.slane %v132_v2, 2 }
 0x1ad   :  { %v134_v5 = vadd.f32 %v133_v3, %v132_v2 }
 0x1af   :  { %v135_v6 = vrot.slane %v134_v5, 1 }
 0x1b1   :  { %v136_v8 = vadd.f32 %v135_v6, %v134_v5 }
 0x1b3   :  { %v149_v9 = vsel %vm148_vm7, %v136_v8, %v129_v7 }
 0x1b4   :  { %198 = vmatmul.msk.f32.vlgmr.msra.gmra.mxu1 %vm122_vm6, %v149_v9 }
 0x231   :  { %v173_v11 = vpop.f32.mrf.mxu1 }
 0x232   :  { %v174_v12 = vadd.f32 %v205_v10, %v173_v11 }
 0x234   :  { %176 = vst [vmem:[#allocation2] sm:$0x3] %v174_v12 }
 0x235   :  { %187 = dma.vmem_to_hbm [thread:$0]  %s183_s15, 32, %s185_s18, [#allocation3]  }
 0x236   :  { %234 = dma.done.wait [#allocation3], 32  }
 0x237   :  { %235 = vsyncadd [#allocation3], 4294967264 }
 0x238   :  { %192 = vsyncpa [#allocation3], 1 }

</bundles_post_ra>
